<compile_context>
chip_gen: v5e
topology: v5e:2x2
jax: 0.10.0
libtpu: 0.0.40
codegen_flags: <defaults>
</compile_context>

<pallas_src>
import math
import jax
import jax.numpy as jnp
from jax.experimental import pallas as pl
from jax.experimental.pallas import tpu as pltpu

_LANE = 128


def _make_pe_table(d_hid: int, n_position: int = 200,
                   dtype=jnp.float32) -> jnp.ndarray:
    """Deterministic sinusoidal table, identical to the PyTorch __init__."""
    position = jnp.arange(0, n_position, dtype=jnp.float32)[:, None]        # (P, 1)
    div_term = jnp.exp(
        jnp.arange(0, d_hid, 2, dtype=jnp.float32) * (-math.log(10000.0) / d_hid)
    )                                                                        # (ceil(D/2),)
    angles = position * div_term                                             # (P, ceil(D/2))
    pe = jnp.zeros((n_position, d_hid), dtype=jnp.float32)
    pe = pe.at[:, 0::2].set(jnp.sin(angles))
    pe = pe.at[:, 1::2].set(jnp.cos(angles)[:, : d_hid // 2])  # handles odd d_hid
    return pe.astype(dtype)                                                  # (P, D)


def prepare_pe_row(pe_table: jnp.ndarray, seq_len: int) -> jnp.ndarray:
    """One-time glue hoisted out of the forward path: first S positions of the
    table, flattened to a single lane-dense f32 row of shape (1, S*D)."""
    P, D = pe_table.shape
    assert seq_len <= P, f"sequence length {seq_len} exceeds n_position {P}"
    return pe_table[:seq_len].astype(jnp.float32).reshape(1, seq_len * D)


def _add_pe_kernel(x_ref, pe_ref, o_ref):
    # x_ref: (row_tile, col_tile); pe_ref: (1, col_tile) -> broadcast over rows.
    # Add in f32, cast on store (free on the VPU; keeps bf16 activations exact-ish).
    o_ref[...] = (x_ref[...].astype(jnp.float32)
                  + pe_ref[...].astype(jnp.float32)).astype(o_ref.dtype)


def _tpu_generation_params():
    """(target x-tile bytes, scoped vmem limit bytes) gated by TPU generation."""
    kind = ""
    try:
        kind = jax.devices()[0].device_kind.lower()
    except Exception:
        pass
    if "v7" in kind:
        # 64 MiB physical VMEM: ~4 MiB tiles -> ~17 MiB double-buffered working
        # set, comfortably inside the 32 MiB scoped default.
        return 4 * 1024 * 1024, 32 * 1024 * 1024
    if "v6" in kind or "trillium" in kind:
        # 128 MiB VMEM, 1.4 TB/s HBM: bigger tiles -> fewer grid steps.
        return 8 * 1024 * 1024, 64 * 1024 * 1024
    # v5e (16 MiB default scoped VMEM) and unknown parts: 4 MiB tiles already
    # saturate HBM; raise the scoped limit so in+out double buffering fits.
    return 4 * 1024 * 1024, 32 * 1024 * 1024


def _sublane_multiple(itemsize: int) -> int:
    """Dtype-aware sublane rounding (sub-32-bit dtypes pack along sublanes)."""
    if itemsize >= 4:
        return 8
    if itemsize == 2:
        return 16
    return 32


def _choose_tiles(rows: int, cols: int, itemsize: int, target_tile_bytes: int):
    """Jointly pick (row_tile, col_tile); ragged edges handled by a cdiv grid."""
    target_elems = max(_LANE * 8, target_tile_bytes // max(itemsize, 1))
    sub = _sublane_multiple(itemsize)

    # Rows: keep the full (usually small) batch per tile unless it alone blows
    # the budget at minimum (128-lane) width.
    if rows <= sub or rows * _LANE <= target_elems:
        row_tile = rows                                   # full extent (always legal)
    else:
        row_tile = max(sub, ((target_elems // _LANE) // sub) * sub)
        row_tile = min(row_tile, rows)

    # Columns: hand the remaining budget to the lane axis, rounded to 128.
    col_tile = max(_LANE, ((target_elems // max(row_tile, 1)) // _LANE) * _LANE)
    if col_tile >= cols:
        col_tile = cols                                   # single full-extent block
    return row_tile, col_tile


def positional_encoding_forward(x: jnp.ndarray, pe_row: jnp.ndarray,
                                *, in_place: bool = True) -> jnp.ndarray:
    """x: (B, S, D); pe_row: (1, S*D) f32 from prepare_pe_row. Returns x + pe."""
    B, S, D = x.shape
    cols = S * D
    assert pe_row.shape == (1, cols), f"pe_row shape {pe_row.shape} != (1, {cols})"

    x2 = x.reshape(B, cols)                               # layout-preserving (free)

    target_tile_bytes, vmem_limit = _tpu_generation_params()
    row_tile, col_tile = _choose_tiles(B, cols, jnp.dtype(x.dtype).itemsize,
                                       target_tile_bytes)

    n_row_blocks = pl.cdiv(B, row_tile)
    n_col_blocks = pl.cdiv(cols, col_tile)

    # Put the axis that actually has >=2 steps first so v7x's 2 TensorCores
    # shard real work; keep pe's block index constant across the inner axis so
    # each pe chunk is fetched exactly once.
    if n_col_blocks >= n_row_blocks:
        grid = (n_col_blocks, n_row_blocks)
        x_map = lambda c, r: (r, c)
        pe_map = lambda c, r: (0, c)
    else:
        grid = (n_row_blocks, n_col_blocks)
        x_map = lambda r, c: (r, c)
        pe_map = lambda r, c: (0, c)

    out2 = pl.pallas_call(
        _add_pe_kernel,
        out_shape=jax.ShapeDtypeStruct((B, cols), x.dtype),
        grid_spec=pltpu.PrefetchScalarGridSpec(
            num_scalar_prefetch=0,
            grid=grid,
            in_specs=[
                pl.BlockSpec((row_tile, col_tile), x_map),   # x
                pl.BlockSpec((1, col_tile), pe_map),         # pe (f32)
            ],
            out_specs=pl.BlockSpec((row_tile, col_tile), x_map),
        ),
        compiler_params=pltpu.CompilerParams(
            dimension_semantics=("parallel", "parallel"),
            vmem_limit_bytes=vmem_limit,
        ),
        # In-place add on the activation buffer when the caller donates x.
        input_output_aliases=({0: 0} if in_place else {}),
    )(x2, pe_row)
    return out2.reshape(B, S, D)


if __name__ == "__main__":
    key = jax.random.PRNGKey(0)
    B, S, D = 2, 8, 32           # batch=2, seq=8, hidden=32
    n_position = 200

    x = jax.random.normal(key, (B, S, D), dtype=jnp.float32)
    pe_table = _make_pe_table(D, n_position)
    pe_row = prepare_pe_row(pe_table, S)     # hoisted one-time glue

    # Pure-JAX reference of the PyTorch forward, computed BEFORE x is donated.
    ref = jax.block_until_ready(x + pe_table[None, :S, :])

    fwd = jax.jit(positional_encoding_forward, donate_argnums=(0,))
    out = jax.block_until_ready(fwd(x, pe_row))

    assert out.shape == (B, S, D)
    assert jnp.allclose(out, ref, atol=1e-6), "mismatch vs reference"

    print("KERNEL_OK")
</pallas_src>

<mosaic_0001>
module attributes {stable_mosaic.version = 11 : i64} {
  func.func @_add_pe_kernel(%arg0: i32, %arg1: i32, %arg2: memref<2x256xf32, #tpu.memory_space<vmem>>, %arg3: memref<1x256xf32, #tpu.memory_space<vmem>>, %arg4: memref<2x256xf32, #tpu.memory_space<vmem>>) attributes {dimension_semantics = [#tpu.dimension_semantics<parallel>, #tpu.dimension_semantics<parallel>], iteration_bounds = array<i64: 1, 1>, scalar_prefetch = 0 : i64, scratch_operands = 0 : i64, tpu.core_type = #tpu.core_type<tc>, window_params = [{transform_indices = @transform_0, window_bounds = array<i64: 2, 256>}, {transform_indices = @transform_1, window_bounds = array<i64: 1, 256>}, {transform_indices = @transform_2, window_bounds = array<i64: 2, 256>}]} {
    %c0 = arith.constant 0 : index
    %c0_0 = arith.constant 0 : index
    %0 = vector.load %arg2[%c0, %c0_0] : memref<2x256xf32, #tpu.memory_space<vmem>>, vector<2x256xf32>
    %c0_1 = arith.constant 0 : index
    %c0_2 = arith.constant 0 : index
    %1 = vector.load %arg3[%c0_1, %c0_2] : memref<1x256xf32, #tpu.memory_space<vmem>>, vector<1x256xf32>
    %2 = vector.broadcast %1 : vector<1x256xf32> to vector<2x256xf32>
    %3 = arith.addf %0, %2 : vector<2x256xf32>
    %c0_3 = arith.constant 0 : index
    %c0_4 = arith.constant 0 : index
    %4 = vector.load %arg4[%c0_3, %c0_4] : memref<2x256xf32, #tpu.memory_space<vmem>>, vector<2x256xf32>
    tpu.vector_store %arg4[%c0_3, %c0_4], %3 {strides = array<i32>} : memref<2x256xf32, #tpu.memory_space<vmem>>, vector<2x256xf32>,
    return
  }
  func.func @transform_0(%arg0: i32, %arg1: i32) -> (i32, i32) {
    %c0_i32 = arith.constant 0 : i32
    return %arg1, %arg0 : i32, i32
  }
  func.func @transform_1(%arg0: i32, %arg1: i32) -> (i32, i32) {
    %c0_i32 = arith.constant 0 : i32
    %c0_i32_0 = arith.constant 0 : i32
    return %c0_i32, %arg0 : i32, i32
  }
  func.func @transform_2(%arg0: i32, %arg1: i32) -> (i32, i32) {
    %c0_i32 = arith.constant 0 : i32
    return %arg1, %arg0 : i32, i32
  }
}

</mosaic_0001>

<bundles_post_ra>
// kernel: positional_encoding_forward.1
= control target key start
LH: loop header
LB: loop body
LE: loop exit
PB: predicated region body
PF: predicated region fallthrough
CT: control target
= control target key end

     0   :  { %vm17_vm0 = vcmask 1041408   ;;  %s50_s1 = inlined_call_operand.vmem [shape: f32[1,256], index: 1, kind: input, shape index: {}]   ;;  %s51_s0 = inlined_call_operand.vmem [shape: f32[2,256], index: 0, kind: input, shape index: {}, may-alias: {0,2}]   ;;  %s52_s2 = inlined_call_operand.vmem [shape: f32[2,256], index: 2, kind: output, shape index: {}, may-alias: {0,2}]  }
   0x1   :  { %v12_v0 = vld [vmem:[%s50_s1] sm:$0x3] }
   0x2   :  { %v14_v1 = vperm.slane %v12_v0, 0  ;;  %v15_v2 = vperm.slane %v12_v0, 1  ;;  %v11_v3 = vld [vmem:[%s51_s0] sm:$0xf] }
   0x4   :  { %v16_v4 = vrot.slane %v15_v2, 6 }
   0x6   :  { %v18_v5 = vsel %vm17_vm0, %v14_v1, %v16_v4 }
   0x7   :  { %v20_v6 = vadd.f32 %v18_v5, %v11_v3 }
   0x9   :  { %21 = vst [vmem:[%s52_s2] sm:$0xf] %v20_v6 }

</bundles_post_ra>
